<compile_context>
chip_gen: v7x
topology: tpu7x:2x2x1
jax: 0.10.0
libtpu: 0.0.40
codegen_flags: <defaults>
</compile_context>

<pallas_src>
import functools

import jax
import jax.numpy as jnp
from jax import lax
from jax.experimental import pallas as pl
from jax.experimental.pallas import tpu as pltpu


LANES = 128        # lane width (last dim), full vreg
CHUNK_ROWS = 32    # in-kernel register chunk: (32, 128) int32 = 4 vregs
BLOCK_ROWS = 512   # rows per grid step: (512, 128) int32 = 256 KiB per block
UNROLL = 16        # vocab select-scan unroll factor (vocab padded to multiple)


def _round_up(x: int, m: int) -> int:
    return ((x + m - 1) // m) * m


def _vocab_lookup_kernel(vocab_smem, tokens_ref, out_ref, *,
                         unk_idx: int, v_padded: int, n_chunks: int):
    """tokens_ref/out_ref: [block_rows, 128] int32; vocab_smem: [V_pad] int32 SMEM."""

    @pl.loop(0, n_chunks)
    def _(c):
        r0 = pl.multiple_of(c * CHUNK_ROWS, CHUNK_ROWS)
        tok = tokens_ref[pl.ds(r0, CHUNK_ROWS), :]            # 4 int32 vregs
        init = jnp.full(tok.shape, unk_idx, dtype=jnp.int32)  # unk by default

        def body(i, acc):
            # Reverse iteration so the FIRST matching vocab entry wins
            # (matches ScriptVocabulary first-occurrence semantics).
            v = v_padded - 1 - i
            entry = vocab_smem[v]                 # cheap SMEM scalar read
            return jnp.where(tok == entry, v, acc)

        # Accumulator stays register-resident (4 vregs); one store per chunk.
        out_ref[pl.ds(r0, CHUNK_ROWS), :] = lax.fori_loop(
            0, v_padded, body, init, unroll=UNROLL)


def vocab_transform_lookup(token_ids: jax.Array, vocab_ids: jax.Array,
                           unk_idx: int = 0) -> jax.Array:
    """token_ids: int32 [B, S]; vocab_ids: int32 [V] -> int32 [B, S]."""
    B, S = token_ids.shape
    V = int(vocab_ids.shape[0])
    T = B * S

    # ---- choose rows / block_rows: lane-dense slab, big blocks, grid >= 2
    #      when the input is large enough to benefit (v7x megacore) ----
    rows_needed = -(-T // LANES)
    if rows_needed <= BLOCK_ROWS:
        n_rows = max(CHUNK_ROWS, _round_up(rows_needed, CHUNK_ROWS))
        block_rows = n_rows
    else:
        n_rows = _round_up(rows_needed, BLOCK_ROWS)
        block_rows = BLOCK_ROWS
    T_pad = n_rows * LANES
    n_chunks = block_rows // CHUNK_ROWS
    grid = (n_rows // block_rows,)

    # ---- token slab: pad/copy only when actually needed ----
    flat = token_ids.reshape(-1).astype(jnp.int32)
    if T_pad != T:
        flat = jnp.zeros((T_pad,), dtype=jnp.int32).at[:T].set(flat)
    slab = flat.reshape(n_rows, LANES)

    # ---- vocab: pad with -1 sentinel (hash ids are >= 0, never match) so the
    #      trip count divides the unroll factor; kept 1-D for SMEM prefetch ----
    V_pad = max(UNROLL, _round_up(V, UNROLL))
    if V_pad != V:
        vocab_padded = jnp.full((V_pad,), -1, dtype=jnp.int32).at[:V].set(
            vocab_ids.astype(jnp.int32))
    else:
        vocab_padded = vocab_ids.astype(jnp.int32)

    kernel = functools.partial(_vocab_lookup_kernel, unk_idx=unk_idx,
                               v_padded=V_pad, n_chunks=n_chunks)

    out_slab = pl.pallas_call(
        kernel,
        out_shape=jax.ShapeDtypeStruct((n_rows, LANES), jnp.int32),
        grid_spec=pltpu.PrefetchScalarGridSpec(
            num_scalar_prefetch=1,                  # vocab -> SMEM, resident
            grid=grid,
            in_specs=[pl.BlockSpec((block_rows, LANES),
                                   lambda i, vocab: (i, 0))],
            out_specs=pl.BlockSpec((block_rows, LANES),
                                   lambda i, vocab: (i, 0)),
        ),
        compiler_params=pltpu.CompilerParams(
            dimension_semantics=("parallel",)),
        cost_estimate=pl.CostEstimate(
            flops=2 * T * V,                        # compare + select per entry
            transcendentals=0,
            bytes_accessed=4 * (2 * T + V)),
    )(vocab_padded, slab)

    out_flat = out_slab.reshape(-1)
    if T_pad != T:
        out_flat = out_flat[:T]                     # padded slots are garbage
    return out_flat.reshape(B, S)


# ---------------------------------------------------------------------------
# Glue: deterministic string -> int32 hashing (stands in for the string side
# of ScriptVocabulary, which has no on-device equivalent).
# ---------------------------------------------------------------------------
def _fnv1a_32(s: str) -> int:
    h = 0x811C9DC5
    for ch in s.encode("utf-8"):
        h ^= ch
        h = (h * 0x01000193) & 0xFFFFFFFF
    return int(h & 0x7FFFFFFF)        # fold into the non-negative int32 range


def reference_lookup_2d(tokens, vocab_list, unk_idx=0):
    v2i = {}
    for i, t in enumerate(vocab_list):   # first occurrence wins
        v2i.setdefault(t, i)
    return [[v2i.get(t, unk_idx) for t in row] for row in tokens]


if __name__ == "__main__":
    # ScriptVocabulary(vocab_list) path: unk token sits at index 0.
    vocab_list = ["__UNK__", "__PAD__", "the", "cat", "sat", "on", "mat",
                  "a", "dog", "ran", "fast", "jax", "tpu", "pallas",
                  "kernel", "hello"]
    unk_idx = 0

    vocab_hashes = [_fnv1a_32(t) for t in vocab_list]
    # Correctness guard: hash collisions inside the vocab would break lookup.
    assert len(set(vocab_hashes)) == len(vocab_hashes), "vocab hash collision"
    vocab_ids = jnp.array(vocab_hashes, dtype=jnp.int32)
    V = len(vocab_list)

    # --- test 1: small 2-D batch of string tokens (B=2, S=8), incl. OOV ---
    tokens = [
        ["the", "cat", "sat", "on", "the", "mat", "zzz_oov", "__PAD__"],
        ["a", "dog", "ran", "fast", "hello", "unknown_tok", "tpu", "pallas"],
    ]
    token_ids = jnp.array([[_fnv1a_32(t) for t in row] for row in tokens],
                          dtype=jnp.int32)

    out = vocab_transform_lookup(token_ids, vocab_ids, unk_idx=unk_idx)
    out = jax.block_until_ready(out)

    expected = jnp.array(reference_lookup_2d(tokens, vocab_list, unk_idx),
                         dtype=jnp.int32)
    assert out.shape == expected.shape and out.dtype == jnp.int32
    assert bool(jnp.all(out == expected)), (out, expected)

    # Shared setup for the synthetic tests: OOV hashes must not collide.
    oov_strings = [f"__oov_{i}__" for i in range(4)]
    oov_hashes = [_fnv1a_32(s) for s in oov_strings]
    assert not set(oov_hashes) & set(vocab_hashes)
    all_ids = jnp.concatenate(
        [vocab_ids, jnp.array(oov_hashes, dtype=jnp.int32)])

    key = jax.random.PRNGKey(0)
    k2, k3 = jax.random.split(key)

    # --- test 2: exact-multiple batch (no pad path, several in-kernel chunks)
    B2, S2 = 4, 4096          # T = 16384 -> 128 rows, 4 chunks, grid = 1
    idx2 = jax.random.randint(k2, (B2, S2), 0, all_ids.shape[0])
    tok2 = all_ids[idx2].astype(jnp.int32)
    expected2 = jnp.where(idx2 < V, idx2, unk_idx).astype(jnp.int32)

    out2 = jax.block_until_ready(
        vocab_transform_lookup(tok2, vocab_ids, unk_idx=unk_idx))
    assert out2.shape == expected2.shape and out2.dtype == jnp.int32
    assert bool(jnp.all(out2 == expected2))

    # --- test 3: larger ragged batch (padding + grid of 2 blocks) ---
    B3, S3 = 2, 40000         # T = 80000 -> 625 rows -> padded to 1024, grid=2
    idx3 = jax.random.randint(k3, (B3, S3), 0, all_ids.shape[0])
    tok3 = all_ids[idx3].astype(jnp.int32)
    expected3 = jnp.where(idx3 < V, idx3, unk_idx).astype(jnp.int32)

    out3 = jax.block_until_ready(
        vocab_transform_lookup(tok3, vocab_ids, unk_idx=unk_idx))
    assert out3.shape == expected3.shape and out3.dtype == jnp.int32
    assert bool(jnp.all(out3 == expected3))

    print("KERNEL_OK")
</pallas_src>

<mosaic_0001>
module attributes {stable_mosaic.version = 11 : i64} {
  func.func @_vocab_lookup_kernel(%arg0: i32, %arg1: memref<16xi32, #tpu.memory_space<smem>>, %arg2: memref<32x128xi32, #tpu.memory_space<vmem>>, %arg3: memref<32x128xi32, #tpu.memory_space<vmem>>) attributes {dimension_semantics = [#tpu.dimension_semantics<parallel>], iteration_bounds = array<i64: 1>, scalar_prefetch = 1 : i64, scratch_operands = 0 : i64, tpu.core_type = #tpu.core_type<tc>, window_params = [{transform_indices = @transform_0, window_bounds = array<i64: 32, 128>}, {transform_indices = @transform_1, window_bounds = array<i64: 32, 128>}]} {
    %c0_i32 = arith.constant 0 : i32
    %c1_i32 = arith.constant 1 : i32
    %0 = arith.muli %c0_i32, %c1_i32 : i32
    %c0_i32_0 = arith.constant 0 : i32
    %1 = arith.addi %c0_i32_0, %0 : i32
    %c32_i32 = arith.constant 32 : i32
    %2 = arith.muli %1, %c32_i32 : i32
    %3 = tpu.assume_multiple %2, 32 : i32
    %4 = arith.index_cast %3 : i32 to index
    %c0 = arith.constant 0 : index
    %5 = vector.load %arg2[%4, %c0] : memref<32x128xi32, #tpu.memory_space<vmem>>, vector<32x128xi32>
    %c0_i32_1 = arith.constant 0 : i32
    %6 = vector.broadcast %c0_i32_1 : i32 to vector<32x128xi32>
    %c0_i32_2 = arith.constant 0 : i32
    %c15_i32 = arith.constant 15 : i32
    %7 = arith.subi %c15_i32, %c0_i32_2 : i32
    %8 = arith.index_cast %7 : i32 to index
    %9 = memref.load %arg1[%8] : memref<16xi32, #tpu.memory_space<smem>>
    %10 = vector.broadcast %9 : i32 to vector<32x128xi32>
    %11 = arith.cmpi eq, %5, %10 : vector<32x128xi32>
    %12 = vector.broadcast %7 : i32 to vector<32x128xi32>
    %13 = arith.select %11, %12, %6 : vector<32x128xi1>, vector<32x128xi32>
    %c1_i32_3 = arith.constant 1 : i32
    %c15_i32_4 = arith.constant 15 : i32
    %14 = arith.subi %c15_i32_4, %c1_i32_3 : i32
    %15 = arith.index_cast %14 : i32 to index
    %16 = memref.load %arg1[%15] : memref<16xi32, #tpu.memory_space<smem>>
    %17 = vector.broadcast %16 : i32 to vector<32x128xi32>
    %18 = arith.cmpi eq, %5, %17 : vector<32x128xi32>
    %19 = vector.broadcast %14 : i32 to vector<32x128xi32>
    %20 = arith.select %18, %19, %13 : vector<32x128xi1>, vector<32x128xi32>
    %c2_i32 = arith.constant 2 : i32
    %c15_i32_5 = arith.constant 15 : i32
    %21 = arith.subi %c15_i32_5, %c2_i32 : i32
    %22 = arith.index_cast %21 : i32 to index
    %23 = memref.load %arg1[%22] : memref<16xi32, #tpu.memory_space<smem>>
    %24 = vector.broadcast %23 : i32 to vector<32x128xi32>
    %25 = arith.cmpi eq, %5, %24 : vector<32x128xi32>
    %26 = vector.broadcast %21 : i32 to vector<32x128xi32>
    %27 = arith.select %25, %26, %20 : vector<32x128xi1>, vector<32x128xi32>
    %c3_i32 = arith.constant 3 : i32
    %c15_i32_6 = arith.constant 15 : i32
    %28 = arith.subi %c15_i32_6, %c3_i32 : i32
    %29 = arith.index_cast %28 : i32 to index
    %30 = memref.load %arg1[%29] : memref<16xi32, #tpu.memory_space<smem>>
    %31 = vector.broadcast %30 : i32 to vector<32x128xi32>
    %32 = arith.cmpi eq, %5, %31 : vector<32x128xi32>
    %33 = vector.broadcast %28 : i32 to vector<32x128xi32>
    %34 = arith.select %32, %33, %27 : vector<32x128xi1>, vector<32x128xi32>
    %c4_i32 = arith.constant 4 : i32
    %c15_i32_7 = arith.constant 15 : i32
    %35 = arith.subi %c15_i32_7, %c4_i32 : i32
    %36 = arith.index_cast %35 : i32 to index
    %37 = memref.load %arg1[%36] : memref<16xi32, #tpu.memory_space<smem>>
    %38 = vector.broadcast %37 : i32 to vector<32x128xi32>
    %39 = arith.cmpi eq, %5, %38 : vector<32x128xi32>
    %40 = vector.broadcast %35 : i32 to vector<32x128xi32>
    %41 = arith.select %39, %40, %34 : vector<32x128xi1>, vector<32x128xi32>
    %c5_i32 = arith.constant 5 : i32
    %c15_i32_8 = arith.constant 15 : i32
    %42 = arith.subi %c15_i32_8, %c5_i32 : i32
    %43 = arith.index_cast %42 : i32 to index
    %44 = memref.load %arg1[%43] : memref<16xi32, #tpu.memory_space<smem>>
    %45 = vector.broadcast %44 : i32 to vector<32x128xi32>
    %46 = arith.cmpi eq, %5, %45 : vector<32x128xi32>
    %47 = vector.broadcast %42 : i32 to vector<32x128xi32>
    %48 = arith.select %46, %47, %41 : vector<32x128xi1>, vector<32x128xi32>
    %c6_i32 = arith.constant 6 : i32
    %c15_i32_9 = arith.constant 15 : i32
    %49 = arith.subi %c15_i32_9, %c6_i32 : i32
    %50 = arith.index_cast %49 : i32 to index
    %51 = memref.load %arg1[%50] : memref<16xi32, #tpu.memory_space<smem>>
    %52 = vector.broadcast %51 : i32 to vector<32x128xi32>
    %53 = arith.cmpi eq, %5, %52 : vector<32x128xi32>
    %54 = vector.broadcast %49 : i32 to vector<32x128xi32>
    %55 = arith.select %53, %54, %48 : vector<32x128xi1>, vector<32x128xi32>
    %c7_i32 = arith.constant 7 : i32
    %c15_i32_10 = arith.constant 15 : i32
    %56 = arith.subi %c15_i32_10, %c7_i32 : i32
    %57 = arith.index_cast %56 : i32 to index
    %58 = memref.load %arg1[%57] : memref<16xi32, #tpu.memory_space<smem>>
    %59 = vector.broadcast %58 : i32 to vector<32x128xi32>
    %60 = arith.cmpi eq, %5, %59 : vector<32x128xi32>
    %61 = vector.broadcast %56 : i32 to vector<32x128xi32>
    %62 = arith.select %60, %61, %55 : vector<32x128xi1>, vector<32x128xi32>
    %c8_i32 = arith.constant 8 : i32
    %c15_i32_11 = arith.constant 15 : i32
    %63 = arith.subi %c15_i32_11, %c8_i32 : i32
    %64 = arith.index_cast %63 : i32 to index
    %65 = memref.load %arg1[%64] : memref<16xi32, #tpu.memory_space<smem>>
    %66 = vector.broadcast %65 : i32 to vector<32x128xi32>
    %67 = arith.cmpi eq, %5, %66 : vector<32x128xi32>
    %68 = vector.broadcast %63 : i32 to vector<32x128xi32>
    %69 = arith.select %67, %68, %62 : vector<32x128xi1>, vector<32x128xi32>
    %c9_i32 = arith.constant 9 : i32
    %c15_i32_12 = arith.constant 15 : i32
    %70 = arith.subi %c15_i32_12, %c9_i32 : i32
    %71 = arith.index_cast %70 : i32 to index
    %72 = memref.load %arg1[%71] : memref<16xi32, #tpu.memory_space<smem>>
    %73 = vector.broadcast %72 : i32 to vector<32x128xi32>
    %74 = arith.cmpi eq, %5, %73 : vector<32x128xi32>
    %75 = vector.broadcast %70 : i32 to vector<32x128xi32>
    %76 = arith.select %74, %75, %69 : vector<32x128xi1>, vector<32x128xi32>
    %c10_i32 = arith.constant 10 : i32
    %c15_i32_13 = arith.constant 15 : i32
    %77 = arith.subi %c15_i32_13, %c10_i32 : i32
    %78 = arith.index_cast %77 : i32 to index
    %79 = memref.load %arg1[%78] : memref<16xi32, #tpu.memory_space<smem>>
    %80 = vector.broadcast %79 : i32 to vector<32x128xi32>
    %81 = arith.cmpi eq, %5, %80 : vector<32x128xi32>
    %82 = vector.broadcast %77 : i32 to vector<32x128xi32>
    %83 = arith.select %81, %82, %76 : vector<32x128xi1>, vector<32x128xi32>
    %c11_i32 = arith.constant 11 : i32
    %c15_i32_14 = arith.constant 15 : i32
    %84 = arith.subi %c15_i32_14, %c11_i32 : i32
    %85 = arith.index_cast %84 : i32 to index
    %86 = memref.load %arg1[%85] : memref<16xi32, #tpu.memory_space<smem>>
    %87 = vector.broadcast %86 : i32 to vector<32x128xi32>
    %88 = arith.cmpi eq, %5, %87 : vector<32x128xi32>
    %89 = vector.broadcast %84 : i32 to vector<32x128xi32>
    %90 = arith.select %88, %89, %83 : vector<32x128xi1>, vector<32x128xi32>
    %c12_i32 = arith.constant 12 : i32
    %c15_i32_15 = arith.constant 15 : i32
    %91 = arith.subi %c15_i32_15, %c12_i32 : i32
    %92 = arith.index_cast %91 : i32 to index
    %93 = memref.load %arg1[%92] : memref<16xi32, #tpu.memory_space<smem>>
    %94 = vector.broadcast %93 : i32 to vector<32x128xi32>
    %95 = arith.cmpi eq, %5, %94 : vector<32x128xi32>
    %96 = vector.broadcast %91 : i32 to vector<32x128xi32>
    %97 = arith.select %95, %96, %90 : vector<32x128xi1>, vector<32x128xi32>
    %c13_i32 = arith.constant 13 : i32
    %c15_i32_16 = arith.constant 15 : i32
    %98 = arith.subi %c15_i32_16, %c13_i32 : i32
    %99 = arith.index_cast %98 : i32 to index
    %100 = memref.load %arg1[%99] : memref<16xi32, #tpu.memory_space<smem>>
    %101 = vector.broadcast %100 : i32 to vector<32x128xi32>
    %102 = arith.cmpi eq, %5, %101 : vector<32x128xi32>
    %103 = vector.broadcast %98 : i32 to vector<32x128xi32>
    %104 = arith.select %102, %103, %97 : vector<32x128xi1>, vector<32x128xi32>
    %c14_i32 = arith.constant 14 : i32
    %c15_i32_17 = arith.constant 15 : i32
    %105 = arith.subi %c15_i32_17, %c14_i32 : i32
    %106 = arith.index_cast %105 : i32 to index
    %107 = memref.load %arg1[%106] : memref<16xi32, #tpu.memory_space<smem>>
    %108 = vector.broadcast %107 : i32 to vector<32x128xi32>
    %109 = arith.cmpi eq, %5, %108 : vector<32x128xi32>
    %110 = vector.broadcast %105 : i32 to vector<32x128xi32>
    %111 = arith.select %109, %110, %104 : vector<32x128xi1>, vector<32x128xi32>
    %c15_i32_18 = arith.constant 15 : i32
    %c15_i32_19 = arith.constant 15 : i32
    %112 = arith.subi %c15_i32_19, %c15_i32_18 : i32
    %113 = arith.index_cast %112 : i32 to index
    %114 = memref.load %arg1[%113] : memref<16xi32, #tpu.memory_space<smem>>
    %115 = vector.broadcast %114 : i32 to vector<32x128xi32>
    %116 = arith.cmpi eq, %5, %115 : vector<32x128xi32>
    %117 = vector.broadcast %112 : i32 to vector<32x128xi32>
    %118 = arith.select %116, %117, %111 : vector<32x128xi1>, vector<32x128xi32>
    %c16_i32 = arith.constant 16 : i32
    %119 = arith.index_cast %3 : i32 to index
    %c0_20 = arith.constant 0 : index
    %120 = vector.load %arg3[%119, %c0_20] : memref<32x128xi32, #tpu.memory_space<vmem>>, vector<32x128xi32>
    tpu.vector_store %arg3[%119, %c0_20], %118 {strides = array<i32>} : memref<32x128xi32, #tpu.memory_space<vmem>>, vector<32x128xi32>,
    %c1_i32_21 = arith.constant 1 : i32
    return
  }
  func.func @transform_0(%arg0: i32, %arg1: memref<16xi32, #tpu.memory_space<smem>>) -> (i32, i32) {
    %c0_i32 = arith.constant 0 : i32
    %c0_i32_0 = arith.constant 0 : i32
    return %arg0, %c0_i32 : i32, i32
  }
  func.func @transform_1(%arg0: i32, %arg1: memref<16xi32, #tpu.memory_space<smem>>) -> (i32, i32) {
    %c0_i32 = arith.constant 0 : i32
    %c0_i32_0 = arith.constant 0 : i32
    return %arg0, %c0_i32 : i32, i32
  }
}

</mosaic_0001>

<bundles_post_ra>
// kernel: tpu_custom_call.1
= control target key start
LH: loop header
LB: loop body
LE: loop exit
PB: predicated region body
PF: predicated region fallthrough
CT: control target
= control target key end

     0   :  { %s532_s0 = inlined_call_operand.hbm [shape: s32[16], index: 0, kind: input, shape index: {}]   ;;  %s533_s1 = inlined_call_operand.hbm [shape: s32[32,128], index: 1, kind: input, shape index: {}]   ;;  %s534_s2 = inlined_call_operand.hbm [shape: s32[32,128], index: 2, kind: output, shape index: {}]  }
   0x1   :  { %s234_s11 = scalar_lea.hbm %s532_s0, 16 }
   0x2   :  { %p235_p0 = scmp.ne.s32.totalorder %s532_s0, %s234_s11  ;;  %p238_p1 = scmp.lt.u32.totalorder %s234_s11, %s532_s0 }
   0x4   :  { %p240_p2 = pnand %p238_p1, %p235_p0 }
   0x6   :  { %243 = shalt.err (!%p240_p2)  }
   0x7   :  { %s294_s16 = smov [#allocation3]  }
   0x8   :  { %8 = dma.hbm_to_smem %s532_s0, 16, %s294_s16, [#allocation2] }
   0x9   :  { %288 = dma.done.wait [#allocation2], 16 }
   0xa   :  { %289 = vsyncadd [#allocation2], 4294967280 }
   0xb   :  { %10 = sfence }
   0xc   :  { %11 = vsyncpa [#allocation5], 0 }
   0xd   :  { %12 = vsyncpa [#allocation6], 0  ;;  %s295_s19 = smov [#allocation4]   ;;  %s244_s23 = scalar_lea.hbm %s533_s1, 512 }
   0xe   :  { %s18_s20 = sshll.u32 %s295_s19, 4  ;;  %p245_p3 = scmp.ne.s32.totalorder %s533_s1, %s244_s23  ;;  %s19_s20 = int_to_ptr.vmem [resolvable:$true] %s18_s20 }
   0xf   :  { %p248_p4 = scmp.lt.u32.totalorder %s244_s23, %s533_s1 }
  0x11   :  { %p250_p5 = pnand %p248_p4, %p245_p3 }
  0x13   :  { %253 = shalt.err (!%p250_p5)
}
  0x14   :  { %s254_s0 = scalar_lea.vmem %s19_s20, 512  ;;  %p259_p7 = scmp.lt.s32.totalorder %s19_s20, %s19_s20 }
  0x15   :  { %p255_p6 = scmp.ne.s32.totalorder %s19_s20, %s254_s0  ;;  %p260_p8 = scmp.lt.s32.totalorder %s254_s0, %s254_s0 }
  0x17   :  { %p261_p9 = por %p260_p8, %p259_p7 }
  0x19   :  { %p262_p10 = pnand %p261_p9, %p255_p6 }
  0x1b   :  { %265 = shalt.err (!%p262_p10)
}
  0x1c   :  { %s296_s28 = smov 128   ;;  %s297_s29 = smov 8  }
  0x1d   :  { %24 = dma.hbm_to_vmem [thread:$0]  %s533_s1, 512, %s19_s20, [#allocation5], %s296_s28, %s296_s28, %s297_s29  }
  0x1e   :  { %290 = dma.done.wait [#allocation5], 512  }
  0x1f   :  { %291 = vsyncadd [#allocation5], 4294966784  ;;  %s213_s4 = sld [smem:[#allocation3 + $0xf]]  ;;  %s214_s5 = sld [smem:[#allocation3 + $0xe]]  ;;  %v346_v0 = vld [vmem:[#allocation4] sm:$0xff]  ;;  %v298_v5 = vmov 0  }
  0x20   :  { %s215_s6 = sld [smem:[#allocation3 + $0xd]]  ;;  %s216_s7 = sld [smem:[#allocation3 + $0xc]]  ;;  %v400_v21 = vld [vmem:[#allocation4 + $0x8] sm:$0xff]  ;;  %v446_v38 = vld [vmem:[#allocation4 + $0x10] sm:$0xff]  ;;  %v31_v54 = vld [vmem:[#allocation4 + $0x18] sm:$0xff] }
  0x21   :  { %s217_s8 = sld [smem:[#allocation3 + $0xb]]  ;;  %s218_s9 = sld [smem:[#allocation3 + $0xa]] }
  0x22   :  { %s219_s10 = sld [smem:[#allocation3 + $0x9]]  ;;  %s220_s11 = sld [smem:[#allocation3 + $0x8]] }
  0x23   :  { %s221_s12 = sld [smem:[#allocation3 + $0x7]]  ;;  %s222_s13 = sld [smem:[#allocation3 + $0x6]] }
  0x24   :  { %s342_s14 = sld [smem:[#allocation3 + $0x5]]  ;;  %s344_s15 = sld [smem:[#allocation3 + $0x4]] }
  0x25   :  { %v348_v1 = vstv %s213_s4  ;;  %v350_v2 = vstv %s214_s5  ;;  %s352_s1 = sld [smem:[#allocation3 + $0x3]]  ;;  %s354_s16 = sld [smem:[#allocation3 + $0x2]] }
  0x26   :  { %vm34_vm0 = vcmp.eq.s32.totalorder %v346_v0, %v348_v1  ;;  %vm44_vm1 = vcmp.eq.s32.totalorder %v346_v0, %v350_v2  ;;  %v360_v3 = vstv %s215_s6  ;;  %v362_v4 = vstv %s216_s7  ;;  %s227_s17 = sld [smem:[#allocation3 + $0x1]]  ;;  %s182_s18 = sld [smem:[#allocation3]] }
  0x27   :  { %v38_v6 = vsel %vm34_vm0, 15, %v298_v5  ;;  %vm54_vm2 = vcmp.eq.s32.totalorder %v346_v0, %v360_v3  ;;  %vm64_vm3 = vcmp.eq.s32.totalorder %v346_v0, %v362_v4  ;;  %v369_v7 = vstv %s217_s8  ;;  %s299_s19 = smov [#allocation7]  }
  0x28   :  { %v48_v8 = vsel %vm44_vm1, 14, %v38_v6  ;;  %vm74_vm4 = vcmp.eq.s32.totalorder %v346_v0, %v369_v7  ;;  %v373_v9 = vstv %s218_s9  ;;  %v375_v10 = vstv %s219_s10  ;;  %s201_s20 = sshll.u32 %s299_s19, 4  ;;  %s202_s20 = int_to_ptr.vmem [resolvable:$true] %s201_s20 }
  0x29   :  { %v58_v11 = vsel %vm54_vm2, 13, %v48_v8  ;;  %vm84_vm5 = vcmp.eq.s32.totalorder %v346_v0, %v373_v9  ;;  %v379_v12 = vstv %s220_s11  ;;  %vm94_vm6 = vcmp.eq.s32.totalorder %v346_v0, %v375_v10  ;;  %s266_s21 = scalar_lea.vmem %s202_s20, 512  ;;  %p271_p12 = scmp.lt.s32.totalorder %s202_s20, %s202_s20 }
  0x2a   :  { %v68_v13 = vsel %vm64_vm3, 12, %v58_v11  ;;  %v383_v14 = vstv %s221_s12  ;;  %v385_v15 = vstv %s222_s13  ;;  %vm104_vm7 = vcmp.eq.s32.totalorder %v346_v0, %v379_v12  ;;  %p267_p11 = scmp.ne.s32.totalorder %s202_s20, %s266_s21  ;;  %p272_p13 = scmp.lt.s32.totalorder %s266_s21, %s266_s21 }
  0x2b   :  { %v78_v16 = vsel %vm74_vm4, 11, %v68_v13  ;;  %v390_v17 = vstv %s342_s14  ;;  %vm114_vm8 = vcmp.eq.s32.totalorder %v346_v0, %v383_v14  ;;  %v395_v19 = vstv %s344_s15 }
  0x2c   :  { %v88_v18 = vsel %vm84_vm5, 10, %v78_v16  ;;  %v398_v20 = vstv %s352_s1  ;;  %vm124_vm9 = vcmp.eq.s32.totalorder %v346_v0, %v385_v15  ;;  %vm134_vm10 = vcmp.eq.s32.totalorder %v346_v0, %v390_v17  ;;  %p273_p0 = por %p272_p13, %p271_p12 }
  0x2d   :  { %v98_v22 = vsel %vm94_vm6, 9, %v88_v18  ;;  %v407_v23 = vstv %s354_s16  ;;  %vm144_vm11 = vcmp.eq.s32.totalorder %v346_v0, %v395_v19  ;;  %vm154_vm12 = vcmp.eq.s32.totalorder %v346_v0, %v398_v20 }
  0x2e   :  { %v108_v24 = vsel %vm104_vm7, 8, %v98_v22  ;;  %vm164_vm13 = vcmp.eq.s32.totalorder %v346_v0, %v407_v23  ;;  %v415_v26 = vstv %s227_s17  ;;  %v417_v27 = vstv %s182_s18  ;;  %p274_p1 = pnand %p273_p0, %p267_p11 }
  0x2f   :  { %v118_v25 = vsel %vm114_vm8, 7, %v108_v24  ;;  %vm35_vm14 = vcmp.eq.s32.totalorder %v400_v21, %v348_v1  ;;  %vm45_vm15 = vcmp.eq.s32.totalorder %v400_v21, %v350_v2  ;;  %vm55_vm0 = vcmp.eq.s32.totalorder %v400_v21, %v360_v3 }
  0x30   :  { %v128_v28 = vsel %vm124_vm9, 6, %v118_v25  ;;  %v39_v29 = vsel %vm35_vm14, 15, %v298_v5  ;;  %vm65_vm1 = vcmp.eq.s32.totalorder %v400_v21, %v362_v4  ;;  %vm75_vm2 = vcmp.eq.s32.totalorder %v400_v21, %v369_v7 }
  0x31   :  { %v138_v30 = vsel %vm134_vm10, 5, %v128_v28  ;;  %v49_v31 = vsel %vm45_vm15, 14, %v39_v29  ;;  %vm174_vm3 = vcmp.eq.s32.totalorder %v346_v0, %v415_v26  ;;  %vm85_vm4 = vcmp.eq.s32.totalorder %v400_v21, %v373_v9 }
  0x32   :  { %v148_v32 = vsel %vm144_vm11, 4, %v138_v30  ;;  %v59_v33 = vsel %vm55_vm0, 13, %v49_v31  ;;  %vm184_vm5 = vcmp.eq.s32.totalorder %v346_v0, %v417_v27  ;;  %vm95_vm6 = vcmp.eq.s32.totalorder %v400_v21, %v375_v10 }
  0x33   :  { %v158_v34 = vsel %vm154_vm12, 3, %v148_v32  ;;  %v69_v35 = vsel %vm65_vm1, 12, %v59_v33  ;;  %vm105_vm7 = vcmp.eq.s32.totalorder %v400_v21, %v379_v12  ;;  %vm115_vm8 = vcmp.eq.s32.totalorder %v400_v21, %v383_v14 }
  0x34   :  { %v168_v36 = vsel %vm164_vm13, 2, %v158_v34  ;;  %v79_v37 = vsel %vm75_vm2, 11, %v69_v35  ;;  %vm125_vm9 = vcmp.eq.s32.totalorder %v400_v21, %v385_v15  ;;  %vm135_vm10 = vcmp.eq.s32.totalorder %v400_v21, %v390_v17 }
  0x35   :  { %v178_v39 = vsel %vm174_vm3, 1, %v168_v36  ;;  %v89_v40 = vsel %vm85_vm4, 10, %v79_v37  ;;  %vm145_vm11 = vcmp.eq.s32.totalorder %v400_v21, %v395_v19  ;;  %vm36_vm12 = vcmp.eq.s32.totalorder %v446_v38, %v348_v1 }
  0x36   :  { %v188_v41 = vsel %vm184_vm5, 0, %v178_v39  ;;  %v99_v42 = vsel %vm95_vm6, 9, %v89_v40  ;;  %vm46_vm13 = vcmp.eq.s32.totalorder %v446_v38, %v350_v2  ;;  %v40_v45 = vsel %vm36_vm12, 15, %v298_v5 }
  0x37   :  { %192 = vst [vmem:[#allocation7] sm:$0xff] %v188_v41  ;;  %v109_v43 = vsel %vm105_vm7, 8, %v99_v42  ;;  %vm56_vm14 = vcmp.eq.s32.totalorder %v446_v38, %v360_v3  ;;  %vm66_vm15 = vcmp.eq.s32.totalorder %v446_v38, %v362_v4  ;;  %vm155_vm0 = vcmp.eq.s32.totalorder %v400_v21, %v398_v20 }
  0x38   :  { %v119_v44 = vsel %vm115_vm8, 7, %v109_v43  ;;  %v50_v47 = vsel %vm46_vm13, 14, %v40_v45  ;;  %vm76_vm1 = vcmp.eq.s32.totalorder %v446_v38, %v369_v7  ;;  %vm165_vm2 = vcmp.eq.s32.totalorder %v400_v21, %v407_v23 }
  0x39   :  { %v129_v46 = vsel %vm125_vm9, 6, %v119_v44  ;;  %v60_v49 = vsel %vm56_vm14, 13, %v50_v47  ;;  %vm86_vm3 = vcmp.eq.s32.totalorder %v446_v38, %v373_v9  ;;  %vm175_vm4 = vcmp.eq.s32.totalorder %v400_v21, %v415_v26 }
  0x3a   :  { %v139_v48 = vsel %vm135_vm10, 5, %v129_v46  ;;  %v70_v51 = vsel %vm66_vm15, 12, %v60_v49  ;;  %vm96_vm5 = vcmp.eq.s32.totalorder %v446_v38, %v375_v10  ;;  %vm185_vm6 = vcmp.eq.s32.totalorder %v400_v21, %v417_v27 }
  0x3b   :  { %v149_v50 = vsel %vm145_vm11, 4, %v139_v48  ;;  %v80_v53 = vsel %vm76_vm1, 11, %v70_v51  ;;  %vm106_vm7 = vcmp.eq.s32.totalorder %v446_v38, %v379_v12  ;;  %vm116_vm8 = vcmp.eq.s32.totalorder %v446_v38, %v383_v14 }
  0x3c   :  { %v159_v52 = vsel %vm155_vm0, 3, %v149_v50  ;;  %v90_v56 = vsel %vm86_vm3, 10, %v80_v53  ;;  %vm126_vm9 = vcmp.eq.s32.totalorder %v446_v38, %v385_v15  ;;  %vm136_vm10 = vcmp.eq.s32.totalorder %v446_v38, %v390_v17 }
  0x3d   :  { %v169_v55 = vsel %vm165_vm2, 2, %v159_v52  ;;  %v100_v58 = vsel %vm96_vm5, 9, %v90_v56  ;;  %vm146_vm11 = vcmp.eq.s32.totalorder %v446_v38, %v395_v19  ;;  %vm37_vm12 = vcmp.eq.s32.totalorder %v31_v54, %v348_v1 }
  0x3e   :  { %v179_v57 = vsel %vm175_vm4, 1, %v169_v55  ;;  %v110_v60 = vsel %vm106_vm7, 8, %v100_v58  ;;  %vm47_vm13 = vcmp.eq.s32.totalorder %v31_v54, %v350_v2  ;;  %v41_v62 = vsel %vm37_vm12, 15, %v298_v5 }
  0x3f   :  { %v189_v59 = vsel %vm185_vm6, 0, %v179_v57  ;;  %v120_v61 = vsel %vm116_vm8, 7, %v110_v60  ;;  %vm57_vm14 = vcmp.eq.s32.totalorder %v31_v54, %v360_v3  ;;  %vm67_vm15 = vcmp.eq.s32.totalorder %v31_v54, %v362_v4 }
  0x40   :  { %193 = vst [vmem:[#allocation7 + $0x8] sm:$0xff] %v189_v59  ;;  %v130_v63 = vsel %vm126_vm9, 6, %v120_v61  ;;  %vm156_vm0 = vcmp.eq.s32.totalorder %v446_v38, %v398_v20  ;;  %v51_v0 = vsel %vm47_vm13, 14, %v41_v62  ;;  %vm77_vm1 = vcmp.eq.s32.totalorder %v31_v54, %v369_v7 }
  0x41   :  { %v140_v6 = vsel %vm136_vm10, 5, %v130_v63  ;;  %vm166_vm2 = vcmp.eq.s32.totalorder %v446_v38, %v407_v23  ;;  %v61_v1 = vsel %vm57_vm14, 13, %v51_v0  ;;  %vm87_vm3 = vcmp.eq.s32.totalorder %v31_v54, %v373_v9 }
  0x42   :  { %v150_v2 = vsel %vm146_vm11, 4, %v140_v6  ;;  %vm176_vm4 = vcmp.eq.s32.totalorder %v446_v38, %v415_v26  ;;  %v71_v3 = vsel %vm67_vm15, 12, %v61_v1  ;;  %vm97_vm5 = vcmp.eq.s32.totalorder %v31_v54, %v375_v10 }
  0x43   :  { %v160_v4 = vsel %vm156_vm0, 3, %v150_v2  ;;  %vm186_vm6 = vcmp.eq.s32.totalorder %v446_v38, %v417_v27  ;;  %v81_v5 = vsel %vm77_vm1, 11, %v71_v3  ;;  %vm107_vm7 = vcmp.eq.s32.totalorder %v31_v54, %v379_v12 }
  0x44   :  { %v170_v7 = vsel %vm166_vm2, 2, %v160_v4  ;;  %v91_v8 = vsel %vm87_vm3, 10, %v81_v5  ;;  %vm117_vm8 = vcmp.eq.s32.totalorder %v31_v54, %v383_v14  ;;  %vm127_vm9 = vcmp.eq.s32.totalorder %v31_v54, %v385_v15 }
  0x45   :  { %v180_v9 = vsel %vm176_vm4, 1, %v170_v7  ;;  %v101_v11 = vsel %vm97_vm5, 9, %v91_v8  ;;  %vm137_vm10 = vcmp.eq.s32.totalorder %v31_v54, %v390_v17  ;;  %vm147_vm11 = vcmp.eq.s32.totalorder %v31_v54, %v395_v19 }
  0x46   :  { %v190_v13 = vsel %vm186_vm6, 0, %v180_v9  ;;  %v111_v16 = vsel %vm107_vm7, 8, %v101_v11  ;;  %vm157_vm12 = vcmp.eq.s32.totalorder %v31_v54, %v398_v20  ;;  %vm167_vm13 = vcmp.eq.s32.totalorder %v31_v54, %v407_v23 }
  0x47   :  { %194 = vst [vmem:[#allocation7 + $0x10] sm:$0xff] %v190_v13  ;;  %v121_v10 = vsel %vm117_vm8, 7, %v111_v16  ;;  %vm177_vm14 = vcmp.eq.s32.totalorder %v31_v54, %v415_v26  ;;  %vm187_vm15 = vcmp.eq.s32.totalorder %v31_v54, %v417_v27 }
  0x48   :  { %v131_v18 = vsel %vm127_vm9, 6, %v121_v10 }
  0x49   :  { %v141_v12 = vsel %vm137_vm10, 5, %v131_v18 }
  0x4a   :  { %v151_v21 = vsel %vm147_vm11, 4, %v141_v12 }
  0x4b   :  { %v161_v14 = vsel %vm157_vm12, 3, %v151_v21 }
  0x4c   :  { %v171_v15 = vsel %vm167_vm13, 2, %v161_v14 }
  0x4d   :  { %v181_v17 = vsel %vm177_vm14, 1, %v171_v15 }
  0x4e   :  { %v191_v22 = vsel %vm187_vm15, 0, %v181_v17 }
  0x4f   :  { %195 = vst [vmem:[#allocation7 + $0x18] sm:$0xff] %v191_v22 }
  0x50   :  { %277 = shalt.err (!%p274_p1)
}
  0x51   :  { %s278_s24 = scalar_lea.hbm %s534_s2, 512 }
  0x52   :  { %p279_p2 = scmp.ne.s32.totalorder %s534_s2, %s278_s24  ;;  %p282_p3 = scmp.lt.u32.totalorder %s278_s24, %s534_s2 }
  0x54   :  { %p284_p4 = pnand %p282_p3, %p279_p2 }
  0x56   :  { %287 = shalt.err (!%p284_p4)
}
  0x57   :  { %207 = dma.vmem_to_hbm [thread:$0]  %s202_s20, 512, %s534_s2, [#allocation6], %s296_s28, %s296_s28, %s297_s29  }
  0x58   :  { %292 = dma.done.wait [#allocation6], 512  }
  0x59   :  { %293 = vsyncadd [#allocation6], 4294966784 }
  0x5a   :  { %211 = vsyncpa [#allocation5], 1 }
  0x5b   :  { %212 = vsyncpa [#allocation6], 1 }

</bundles_post_ra>
